<compile_context>
chip_gen: v6e
topology: v6e:2x2x1
jax: 0.10.0
libtpu: 0.0.40
codegen_flags: <defaults>
</compile_context>

<pallas_src>
import jax
import jax.numpy as jnp
from jax.experimental import pallas as pl
from jax.experimental.pallas import tpu as pltpu

INPUT_SIZE = 1
HIDDEN_SIZE = 10
OUTPUT_SIZE = 1
NUM_HIDDEN_LAYERS = 3   # linear1 .. linear3 (10 -> 10)
HP = 16                 # padded hidden size (2 sublane tiles); row 10 is the "ones" row
LANE = 128
MAX_TB = 1024           # lane-tile cap: keeps the (HP, TB) live activation spill-free


def _round_up(n, m):
    return ((n + m - 1) // m) * m


def _pick_tb(batch):
    """Batch tile on the lane axis: as large as possible (amortize per-step overhead),
    multiple of 128 (unmasked stores), capped at MAX_TB, and chosen so n_tiles >= 2
    whenever B > 128 (lets the 'parallel' grid axis use both TensorCores on v7x)."""
    if batch <= LANE:
        return LANE
    half = -(-batch // 2)                       # ceil(B / 2)
    return min(MAX_TB, _round_up(half, LANE))


def _mlp_kernel(x_ref, p_ref, o_ref):
    """Feature-major activations (features, TB); batch on the 128-wide lane axis.

    p_ref is a single resident (4, HP, HP) parameter pack:
      plane 0, col 0 : input-layer weight (padded to HP rows)
      plane 0, col 1 : input-layer bias, plus 1.0 at row HIDDEN_SIZE (creates the ones row)
      plane 0, col 2 : output-layer weight, plus output bias at row HIDDEN_SIZE
      planes 1..3    : augmented hidden weights [[W, b], [0, 1]] (bias folded into the matmul)
    """
    x = x_ref[...]                                     # (1, TB)
    vecs = p_ref[0]                                    # (HP, HP)
    w_in = vecs[:, 0:1]                                # (HP, 1)
    b_in = vecs[:, 1:2]                                # (HP, 1)
    w_out = vecs[:, 2:3]                               # (HP, 1)

    # linearIn + relu1: contraction dim K = 1 -> VPU broadcast multiply (no MXU).
    h = jnp.maximum(w_in * x + b_in, 0.0)              # (HP, TB); row 10 == 1.0

    # linear1..linear3 + relu2..relu4: (HP, HP) augmented matmuls on the MXU.
    # The ones row is preserved through every layer (W_aug[10,10] == 1, ReLU(1) == 1),
    # so the bias rides along the matmul.  Static loop == fully unrolled (3 iterations).
    for i in range(NUM_HIDDEN_LAYERS):
        w = p_ref[1 + i]                               # (HP, HP)
        h = jnp.dot(w, h, preferred_element_type=jnp.float32)
        h = jnp.maximum(h, 0.0)

    # linearOut: N = 1 -> VPU multiply + sublane reduce; the bias comes from the ones row.
    o_ref[...] = jnp.sum(w_out * h, axis=0, keepdims=True).astype(o_ref.dtype)


def _pack_params(params):
    """Pack PyTorch-convention params [(W (out,in), b (out,)), ...] into one (4, HP, HP) f32."""
    (w_in, b_in), (w1, b1), (w2, b2), (w3, b3), (w_out, b_out) = params
    p = jnp.zeros((1 + NUM_HIDDEN_LAYERS, HP, HP), jnp.float32)
    # plane 0: the three length-10 "vector" parameters + ones-row / bias slots.
    p = p.at[0, :HIDDEN_SIZE, 0].set(w_in[:, 0].astype(jnp.float32))
    p = p.at[0, :HIDDEN_SIZE, 1].set(b_in.astype(jnp.float32))
    p = p.at[0, HIDDEN_SIZE, 1].set(1.0)                       # creates the ones row
    p = p.at[0, :HIDDEN_SIZE, 2].set(w_out[0, :].astype(jnp.float32))
    p = p.at[0, HIDDEN_SIZE, 2].set(b_out[0].astype(jnp.float32))
    # planes 1..3: augmented hidden weights [[W, b], [0, 1]].
    for i, (w, b) in enumerate(((w1, b1), (w2, b2), (w3, b3))):
        p = p.at[1 + i, :HIDDEN_SIZE, :HIDDEN_SIZE].set(w.astype(jnp.float32))
        p = p.at[1 + i, :HIDDEN_SIZE, HIDDEN_SIZE].set(b.astype(jnp.float32))
        p = p.at[1 + i, HIDDEN_SIZE, HIDDEN_SIZE].set(1.0)     # preserves the ones row
    return p


def neural_net_forward(x, params):
    """x: (B, INPUT_SIZE) f32. params: PyTorch convention [(W (out,in), b (out,)), ...]."""
    B = x.shape[0]
    p_pack = _pack_params(params)

    tb = _pick_tb(B)
    n_tiles = pl.cdiv(B, tb)
    b_pad = n_tiles * tb

    # Batch on the lane (last) axis.  INPUT_SIZE == 1 -> pure reshape, no transpose;
    # only the ragged tail is padded (no full-batch zeros+scatter pass).
    x_t = x.astype(jnp.float32).reshape(INPUT_SIZE, B)
    if b_pad != B:
        x_t = jnp.pad(x_t, ((0, 0), (0, b_pad - B)))

    out_t = pl.pallas_call(
        _mlp_kernel,
        out_shape=jax.ShapeDtypeStruct((OUTPUT_SIZE, b_pad), jnp.float32),
        grid=(n_tiles,),
        in_specs=[
            pl.BlockSpec((INPUT_SIZE, tb), lambda i: (0, i)),     # batch tile on lanes
            pl.BlockSpec(p_pack.shape, lambda i: (0, 0, 0)),      # resident param pack
        ],
        out_specs=pl.BlockSpec((OUTPUT_SIZE, tb), lambda i: (0, i)),
        compiler_params=pltpu.CompilerParams(
            dimension_semantics=("parallel",)),   # shards batch tiles across TCs on v7x
    )(x_t, p_pack)

    # Padded lanes hold garbage (bias-driven); slice them off and restore (B, OUTPUT_SIZE).
    return out_t[0, :B].reshape(B, OUTPUT_SIZE)


def init_params(key):
    """Deterministic init mimicking PyTorch nn.Linear (U[-1/sqrt(fan_in), +]), (out,in) weights."""
    dims = [(INPUT_SIZE, HIDDEN_SIZE),
            (HIDDEN_SIZE, HIDDEN_SIZE),
            (HIDDEN_SIZE, HIDDEN_SIZE),
            (HIDDEN_SIZE, HIDDEN_SIZE),
            (HIDDEN_SIZE, OUTPUT_SIZE)]
    params = []
    for fan_in, fan_out in dims:
        key, kw, kb = jax.random.split(key, 3)
        bound = 1.0 / (fan_in ** 0.5)
        w = jax.random.uniform(kw, (fan_out, fan_in), jnp.float32, -bound, bound)
        b = jax.random.uniform(kb, (fan_out,), jnp.float32, -bound, bound)
        params.append((w, b))
    return params


def _reference_forward(x, params):
    h = x
    for i, (w, b) in enumerate(params):
        h = h @ w.T + b
        if i < len(params) - 1:
            h = jnp.maximum(h, 0.0)
    return h


if __name__ == "__main__":
    key = jax.random.PRNGKey(0)
    key, kx = jax.random.split(key)

    # B = 300 -> TB = 256, 2 grid tiles: exercises the adaptive tile pick, the ragged-tail
    # pad, lane-dense stores, and the 2-tile "parallel" axis (v7x TC sharding).
    B = 300
    x = jax.random.normal(kx, (B, INPUT_SIZE), jnp.float32)
    params = init_params(key)

    out = neural_net_forward(x, params)
    out = jax.block_until_ready(out)

    ref = _reference_forward(x, params)
    assert out.shape == (B, OUTPUT_SIZE), out.shape
    assert jnp.allclose(out, ref, atol=1e-5, rtol=1e-5), (out, ref)

    print("KERNEL_OK")
</pallas_src>

<mosaic_0001>
module attributes {stable_mosaic.version = 11 : i64} {
  func.func @_mlp_kernel(%arg0: i32, %arg1: memref<1x256xf32, #tpu.memory_space<vmem>>, %arg2: memref<4x16x16xf32, #tpu.memory_space<vmem>>, %arg3: memref<1x256xf32, #tpu.memory_space<vmem>>) attributes {dimension_semantics = [#tpu.dimension_semantics<parallel>], iteration_bounds = array<i64: 2>, scalar_prefetch = 0 : i64, scratch_operands = 0 : i64, tpu.core_type = #tpu.core_type<tc>, window_params = [{transform_indices = @transform_0, window_bounds = array<i64: 1, 256>}, {pipeline_mode = #tpu.pipeline_mode<synchronous>, transform_indices = @transform_1, window_bounds = array<i64: 4, 16, 16>}, {transform_indices = @transform_2, window_bounds = array<i64: 1, 256>}]} {
    %c0 = arith.constant 0 : index
    %c0_0 = arith.constant 0 : index
    %0 = vector.load %arg1[%c0, %c0_0] : memref<1x256xf32, #tpu.memory_space<vmem>>, vector<1x256xf32>
    %c0_1 = arith.constant 0 : index
    %c0_2 = arith.constant 0 : index
    %c0_3 = arith.constant 0 : index
    %1 = vector.load %arg2[%c0_1, %c0_2, %c0_3] : memref<4x16x16xf32, #tpu.memory_space<vmem>>, vector<1x16x16xf32>
    %2 = vector.shape_cast %1 : vector<1x16x16xf32> to vector<16x16xf32>
    %3 = vector.extract_strided_slice %2 {offsets = [0, 0], sizes = [16, 1], strides = [1, 1]} : vector<16x16xf32> to vector<16x1xf32>
    %4 = vector.extract_strided_slice %2 {offsets = [0, 1], sizes = [16, 1], strides = [1, 1]} : vector<16x16xf32> to vector<16x1xf32>
    %5 = vector.extract_strided_slice %2 {offsets = [0, 2], sizes = [16, 1], strides = [1, 1]} : vector<16x16xf32> to vector<16x1xf32>
    %6 = vector.broadcast %3 : vector<16x1xf32> to vector<16x256xf32>
    %7 = vector.broadcast %0 : vector<1x256xf32> to vector<16x256xf32>
    %8 = arith.mulf %6, %7 : vector<16x256xf32>
    %9 = vector.broadcast %4 : vector<16x1xf32> to vector<16x256xf32>
    %10 = arith.addf %8, %9 : vector<16x256xf32>
    %cst = arith.constant 0.000000e+00 : f32
    %11 = vector.broadcast %cst : f32 to vector<16x256xf32>
    %12 = arith.maximumf %10, %11 : vector<16x256xf32>
    %c1 = arith.constant 1 : index
    %c0_4 = arith.constant 0 : index
    %c0_5 = arith.constant 0 : index
    %13 = vector.load %arg2[%c1, %c0_4, %c0_5] : memref<4x16x16xf32, #tpu.memory_space<vmem>>, vector<1x16x16xf32>
    %14 = vector.shape_cast %13 : vector<1x16x16xf32> to vector<16x16xf32>
    %cst_6 = arith.constant dense<0.000000e+00> : vector<16x256xf32>
    %15 = tpu.matmul %14, %12, %cst_6 {dimension_numbers = #tpu.dot_dimension_numbers<[1], [0], [0], [1], [0, 0, 1, 1], [], []>} : vector<16x16xf32>, vector<16x256xf32>, vector<16x256xf32> -> vector<16x256xf32>
    %cst_7 = arith.constant 0.000000e+00 : f32
    %16 = vector.broadcast %cst_7 : f32 to vector<16x256xf32>
    %17 = arith.maximumf %15, %16 : vector<16x256xf32>
    %c2 = arith.constant 2 : index
    %c0_8 = arith.constant 0 : index
    %c0_9 = arith.constant 0 : index
    %18 = vector.load %arg2[%c2, %c0_8, %c0_9] : memref<4x16x16xf32, #tpu.memory_space<vmem>>, vector<1x16x16xf32>
    %19 = vector.shape_cast %18 : vector<1x16x16xf32> to vector<16x16xf32>
    %cst_10 = arith.constant dense<0.000000e+00> : vector<16x256xf32>
    %20 = tpu.matmul %19, %17, %cst_10 {dimension_numbers = #tpu.dot_dimension_numbers<[1], [0], [0], [1], [0, 0, 1, 1], [], []>} : vector<16x16xf32>, vector<16x256xf32>, vector<16x256xf32> -> vector<16x256xf32>
    %cst_11 = arith.constant 0.000000e+00 : f32
    %21 = vector.broadcast %cst_11 : f32 to vector<16x256xf32>
    %22 = arith.maximumf %20, %21 : vector<16x256xf32>
    %c3 = arith.constant 3 : index
    %c0_12 = arith.constant 0 : index
    %c0_13 = arith.constant 0 : index
    %23 = vector.load %arg2[%c3, %c0_12, %c0_13] : memref<4x16x16xf32, #tpu.memory_space<vmem>>, vector<1x16x16xf32>
    %24 = vector.shape_cast %23 : vector<1x16x16xf32> to vector<16x16xf32>
    %cst_14 = arith.constant dense<0.000000e+00> : vector<16x256xf32>
    %25 = tpu.matmul %24, %22, %cst_14 {dimension_numbers = #tpu.dot_dimension_numbers<[1], [0], [0], [1], [0, 0, 1, 1], [], []>} : vector<16x16xf32>, vector<16x256xf32>, vector<16x256xf32> -> vector<16x256xf32>
    %cst_15 = arith.constant 0.000000e+00 : f32
    %26 = vector.broadcast %cst_15 : f32 to vector<16x256xf32>
    %27 = arith.maximumf %25, %26 : vector<16x256xf32>
    %28 = vector.broadcast %5 : vector<16x1xf32> to vector<16x256xf32>
    %29 = arith.mulf %28, %27 : vector<16x256xf32>
    %cst_16 = arith.constant dense<0.000000e+00> : vector<256xf32>
    %30 = vector.multi_reduction <add>, %29, %cst_16 [0] : vector<16x256xf32> to vector<256xf32>
    %31 = vector.shape_cast %30 : vector<256xf32> to vector<1x256xf32>
    %c0_17 = arith.constant 0 : index
    %c0_18 = arith.constant 0 : index
    %32 = vector.load %arg3[%c0_17, %c0_18] : memref<1x256xf32, #tpu.memory_space<vmem>>, vector<1x256xf32>
    tpu.vector_store %arg3[%c0_17, %c0_18], %31 {strides = array<i32>} : memref<1x256xf32, #tpu.memory_space<vmem>>, vector<1x256xf32>,
    return
  }
  func.func @transform_0(%arg0: i32) -> (i32, i32) {
    %c0_i32 = arith.constant 0 : i32
    %c0_i32_0 = arith.constant 0 : i32
    return %c0_i32, %arg0 : i32, i32
  }
  func.func @transform_1(%arg0: i32) -> (i32, i32, i32) {
    %c0_i32 = arith.constant 0 : i32
    %c0_i32_0 = arith.constant 0 : i32
    %c0_i32_1 = arith.constant 0 : i32
    %c0_i32_2 = arith.constant 0 : i32
    return %c0_i32, %c0_i32_0, %c0_i32_1 : i32, i32, i32
  }
  func.func @transform_2(%arg0: i32) -> (i32, i32) {
    %c0_i32 = arith.constant 0 : i32
    %c0_i32_0 = arith.constant 0 : i32
    return %c0_i32, %arg0 : i32, i32
  }
}

</mosaic_0001>

<bundles_post_ra>
// kernel: tpu_custom_call.1
= control target key start
LH: loop header
LB: loop body
LE: loop exit
PB: predicated region body
PF: predicated region fallthrough
CT: control target
= control target key end

     0   :  { %7 = vsyncpa [#allocation3], 0  ;;  %s1068_s0 = inlined_call_operand.hbm [shape: f32[1,512], index: 0, kind: input, shape index: {}]   ;;  %s1069_s1 = inlined_call_operand.hbm [shape: f32[4,16,16], index: 1, kind: input, shape index: {}]   ;;  %s1070_s2 = inlined_call_operand.hbm [shape: f32[1,512], index: 2, kind: output, shape index: {}]  }
   0x1   :  { %9 = vsyncpa [#allocation3 + $0x1], 0 }
   0x2   :  { %10 = vsyncpa [#allocation6], 0 }
   0x3   :  { %11 = vsyncpa [#allocation4], 0 }
   0x4   :  { %13 = vsyncpa [#allocation4 + $0x1], 0  ;;  %s881_s9 = smov 0   ;;  %s883_s10 = smov 0  }
   0x5   :  { %s885_s11 = smov 0   ;;  %s887_s12 = smov 0  }
   0x6 LB: > { %s902_s13 = sadd.s32 4294967295, %s854_s12   ;;  %s636_s14 = sadd.s32 4294967294, %s854_s12   ;;  %s854_s12 = sphi %s887_s12, %s1092_s12   ;;  %s850_s11 = sphi %s885_s11, %s1091_s11   ;;  %s846_s10 = sphi %s883_s10, %s1090_s10   ;;  %s842_s9 = sphi %s881_s9, %s1089_s9  }
   0x7   : > { %p39_p0 = scmp.ne.s32.totalorder %s846_s10, %s842_s9  ;;  %p1071_p1 = scmp.eq.s32.totalorder %s902_s13, 0 }
   0x8   : > { %p90_p3 = scmp.eq.s32.totalorder %s636_s14, 1  ;;  %p637_p5 = scmp.ge.s32.totalorder %s854_s12, 1 }
   0x9   : > { %p911_p4 = por %p1071_p1, %p39_p0  ;;  %p97_p7 = scmp.lt.s32.totalorder %s854_s12, 3 }
   0xa   : > { %p916_p6 = por %p90_p3, %p39_p0  ;;  %s856_s18 = smov [#allocation5]  }
   0xb   : > { %s1075_s15 = scalar_select %p911_p4, 1, 0 }
   0xc   : > { %s1076_s16 = scalar_select %p916_p6, 1, 0 }
   0xd   : > { %p921_p8 = pnand %p637_p5, %p97_p7  ;;  %s109_s19 = sshll.u32 %s856_s18, 4  ;;  %s110_s19 = int_to_ptr.vmem [resolvable:$true] %s109_s19 }
   0xe   : > { %s935_s21 = sadd.s32 1, %s854_s12   ;;  %s26_s22 = sadd.s32 1, %s850_s11 }
   0xf   : > { %s1077_s17 = scalar_select %p921_p8, 1, 0 }
  0x10   : > { %p672_p9 = pneg %p921_p8  ;;  %s23_s23 = ssub.s32 %s854_s12, %s935_s21 }
  0x11   : > { %s743_s24 = scalar_lea.vmem %s110_s19, 1024  ;;  %p751_p5 = scmp.lt.s32.totalorder %s110_s19, %s110_s19 }
  0x12   : > { %p930_p11 = pnand %p672_p9, %p1071_p1  ;;  %p744_p13 = scmp.ne.s32.totalorder %s110_s19, %s743_s24 }
  0x13   : > { %p752_p7 = scmp.lt.s32.totalorder %s743_s24, %s743_s24 }
  0x14   : > { %p734_p12 = pneg %p930_p11 }
  0x15   : > { %p753_p10 = por %p752_p7, %p751_p5 }
  0x16   : > { %p746_p0 = pnand %p744_p13, %p734_p12 }
  0x18   : > { %p747_p3 = pneg %p746_p0 }
  0x1a   : > { %p754_p2 = pnand %p753_p10, %p747_p3 }
  0x1c   : > { %757 = shalt.err (!%p754_p2)
}
  0x1d   : > { %s857_s25 = smov 128   ;;  %s858_s26 = smov 8  }
  0x1e   : > { %675 = dma.hbm_to_vmem [thread:$0]  (!%p930_p11), %s1069_s1, 1024, %s110_s19, [#allocation6], %s857_s25, %s857_s25, %s858_s26  }
  0x1f   : > { %p24_p9 = scmp.eq.s32.totalorder %s23_s23, 0  ;;  %p33_p12 = scmp.ne.s32.totalorder %s850_s11, %s846_s10 }
  0x20   : > { %p34_p10 = scmp.eq.s32.totalorder %s854_s12, 0  ;;  %p685_p2 = scmp.lt.s32.totalorder %s854_s12, 2 }
  0x21   : > { %s952_s29 = scalar_select %p24_p9, %s850_s11, %s26_s22  }
  0x22   : > { %p35_p13 = por %p34_p10, %p33_p12  ;;  %p1079_p0 = scmp.eq.s32.totalorder %s902_s13, 1 }
  0x23   : > { %s123_s3 = sand.u32 1, %s850_s11   ;;  %s658_s4 = sshll.u32 %s854_s12, 5 }
  0x24   : > { %p956_p3 = por %p1079_p0, %p33_p12  ;;  %s640_s5 = sshll.u32 %s123_s3, 1 }
  0x25   : > { %s965_s8 = scalar_lea.hbm %s1068_s0, %s658_s4  ;;  %s127_s14 = scalar_lea.vmem [#allocation2], %s640_s5 }
  0x26   : > { %s1080_s30 = scalar_select %p956_p3, 1, 0 }
  0x27   : > { %s135_s18 = sshll.u32 %s127_s14, 4  ;;  %p967_p11 = pnand %p685_p2, %p35_p13  ;;  %s136_s18 = int_to_ptr.vmem [resolvable:$true] %s135_s18 }
  0x28   : > { %s124_s20 = scalar_lea.sflag [#allocation3], %s123_s3  ;;  %s758_s22 = scalar_lea.hbm %s965_s8, 32 }
  0x29   : > { %p759_p5 = scmp.ne.s32.totalorder %s965_s8, %s758_s22  ;;  %p760_p7 = pneg %p967_p11 }
  0x2a   : > { %s763_s25 = scalar_lea.hbm %s1068_s0, 64  ;;  %p764_p10 = scmp.lt.s32.totalorder %s965_s8, %s1068_s0 }
  0x2b   : > { %p761_p9 = pnand %p760_p7, %p759_p5  ;;  %p765_p2 = scmp.lt.s32.totalorder %s763_s25, %s758_s22 }
  0x2d   : > { %p762_p12 = pneg %p761_p9  ;;  %p766_p13 = por %p765_p2, %p764_p10 }
  0x2f   : > { %p767_p0 = pnand %p766_p13, %p762_p12 }
  0x31   : > { %770 = shalt.err (!%p767_p0)
}
  0x32   : > { %s771_s28 = scalar_lea.vmem %s136_s18, 32  ;;  %s859_s3 = smov [#allocation2]  }
  0x33   : > { %p772_p1 = scmp.ne.s32.totalorder %s136_s18, %s771_s28  ;;  %s776_s4 = sshll.u32 %s859_s3, 4  ;;  %s777_s4 = int_to_ptr.vmem [resolvable:$false] %s776_s4 }
  0x34   : > { %s778_s5 = scalar_lea.vmem %s777_s4, 64  ;;  %p779_p5 = scmp.lt.s32.totalorder %s136_s18, %s777_s4 }
  0x35   : > { %p774_p6 = pnand %p772_p1, %p760_p7  ;;  %p780_p9 = scmp.lt.s32.totalorder %s778_s5, %s771_s28 }
  0x37   : > { %p775_p3 = pneg %p774_p6  ;;  %p781_p4 = por %p780_p9, %p779_p5 }
  0x39   : > { %p782_p8 = pnand %p781_p4, %p775_p3 }
  0x3b   : > { %785 = shalt.err (!%p782_p8)
}
  0x3c   : > { %679 = dma.hbm_to_vmem [thread:$0]  (!%p967_p11), %s965_s8, 32, %s136_s18, %s124_s20  }
  0x3d   : > { %p1082_p12 = scmp.ne.s32.totalorder %s1077_s17, 0 }
  0x3e   : > { %s988_s6 = sand.u32 (!%p1082_p12), 1, %s846_s10   ;;  %p1083_p1 = scmp.ne.s32.totalorder (!%p1082_p12), %s1075_s15, 0 }
  0x3f   : > { %144 = sbr.rel (%p1082_p12) target bundleno = 852 (0x354), region = 28  ;;  %s644_s7 = sshll.u32 (!%p1082_p12), %s988_s6, 1 }
  0x40   : > { %s147_s14 = scalar_lea.sflag (!%p1082_p12), [#allocation3], %s988_s6  ;;  %s150_s22 = scalar_lea.vmem (!%p1082_p12), [#allocation2], %s644_s7 }
  0x44   : > { %829 = dma.done.wait (%p1083_p1), %s147_s14, 32  }
  0x45   : > { %831 = vsyncadd (%p1083_p1), %s147_s14, 4294967264  ;;  %p1084_p4 = scmp.eq.s32.totalorder %s902_s13, 0 }
  0x47   : > { %833 = dma.done.wait (%p1084_p4), [#allocation6], 1024   ;;  %p1085_p6 = pmov %p1084_p4 }
  0x48   : > { %v860_v0 = vmov 1   ;;  %v861_v1 = vmov 0   ;;  %v1002_v2 = vld [vmem:[#allocation5 + $0x8] sm:$0xff]  ;;  %v1006_v3 = vld [vmem:[#allocation5] sm:$0xff]  ;;  %v862_v4 = vmov 0.0   ;;  %v191_v5 = vlaneseq  ;;  %v222_v28 = vld [vmem:[#allocation5 + $0x10] sm:$0xff] }
  0x49   : > { %835 = vsyncadd (%p1085_p6), [#allocation6], 4294966272  ;;  %729 = vset.pattern.permute.xlu1 %v860_v0  ;;  %728 = vset.pattern.permute.xlu0 %v861_v1  ;;  %v177_v9 = vld [vmem:[%s150_s22] sm:$0x3]  ;;  %vm224_vm0 = vcmask 130048   ;;  %v313_v38 = vld [vmem:[#allocation5 + $0x20] sm:$0xff] }
  0x4a   : > { %210 = vperm.xlu1 %729, %v1002_v2   ;;  %187 = vperm.xlu0 %728, %v1002_v2   ;;  %v1013_v6 = vshrl.u32 %v191_v5, 7  ;;  %v223_v29 = vld [vmem:[#allocation5 + $0x18] sm:$0xff]  ;;  %v314_v39 = vld [vmem:[#allocation5 + $0x28] sm:$0xff]  ;;  %v863_v40 = vmov 2   ;;  %v403_v49 = vld [vmem:[#allocation5 + $0x30] sm:$0xff]  ;;  %s659_s15 = sshll.u32 %s902_s13, 5 }
  0x4b   : > { %295 = vmatprep.mubr.f32.mxu0 %v862_v4  ;;  %301 = vmatprep.mubr.f32.mxu1 %v862_v4  ;;  %v404_v50 = vld [vmem:[#allocation5 + $0x38] sm:$0xff]  ;;  %s174_s17 = scalar_lea.vmem [#allocation7], %s644_s7  ;;  %vm538_vm1 = vcmp.lt.s32.totalorder %v191_v5, 256  ;;  %s554_s20 = scalar_lea.hbm %s1070_s2, %s659_s15 }
  0x4c   : > { %v193_v7 = vsub.s32 0, %v1013_v6  ;;  %v197_v8 = vsub.s32 1, %v1013_v6  ;;  %s556_s8 = sshll.u32 %s174_s17, 4  ;;  %s542_s23 = scalar_lea.sflag [#allocation4], %s988_s6  ;;  %s557_s8 = int_to_ptr.vmem [resolvable:$true] %s556_s8 }
  0x4d   : > { %s786_s24 = scalar_lea.vmem %s557_s8, 32  ;;  %p1086_p3 = scmp.ne.s32.totalorder %s1080_s30, 0 }
  0x4e   : > { %206 = vperm.xlu1 %729, %v1006_v3   ;;  %182 = vperm.xlu0 %728, %v1006_v3   ;;  %v194_v10 = vrot.slane %v177_v9, %v193_v7  ;;  %v198_v11 = vrot.slane %v177_v9, %v197_v8  ;;  %v864_v8 = vmov 1966171168   ;;  %p787_p8 = scmp.ne.s32.totalorder %s557_s8, %s786_s24  ;;  %s865_s13 = smov [#allocation7]  }
  0x4f   : > { %v522_v9 = vunpack.c.l.s4 %v864_v8  ;;  %s790_s25 = sshll.u32 %s865_s13, 4  ;;  %s791_s25 = int_to_ptr.vmem [resolvable:$false] %s790_s25 }
  0x50   : > { %p788_p11 = pnand %p787_p8, %p1086_p3  ;;  %s792_s26 = scalar_lea.vmem %s791_s25, 64 }
  0x51   : > { %p793_p10 = scmp.lt.s32.totalorder %s557_s8, %s791_s25  ;;  %p794_p2 = scmp.lt.s32.totalorder %s792_s26, %s786_s24 }
  0x52   : > { %730 = vset.pattern.permute.xlu0 %v863_v40  ;;  %731 = vset.pattern.permute.xlu1 %v863_v40  ;;  %p789_p7 = pneg %p788_p11 }
  0x53   : > { %493 = vperm.xlu0 %730, %v1006_v3   ;;  %497 = vperm.xlu1 %731, %v1002_v2   ;;  %p795_p13 = por %p794_p2, %p793_p10 }
  0x55   : > { %p796_p0 = pnand %p795_p13, %p789_p7 }
  0xc5   : > { %v211_v12 = vpop.permute.xlu1 %210  ;;  %v188_v13 = vpop.permute.xlu0 %187 }
  0xc6   : > { %v203_v14 = vmul.f32 %v194_v10, %v188_v13  ;;  %v204_v15 = vmul.f32 %v198_v11, %v188_v13 }
  0xc8   : > { %v216_v16 = vadd.f32 %v211_v12, %v204_v15  ;;  %v215_v17 = vadd.f32 %v211_v12, %v203_v14  ;;  %v523_v14 = vunpack.c.0.s8 %v522_v9 }
  0xc9   : > { %v183_v18 = vpop.permute.xlu0 %182  ;;  %v207_v23 = vpop.permute.xlu1 %206 }
  0xca   : > { %v201_v19 = vmul.f32 %v194_v10, %v183_v18  ;;  %v202_v20 = vmul.f32 %v198_v11, %v183_v18  ;;  %v220_v21 = vmax.f32 %v216_v16, 0.0  ;;  %v219_v22 = vmax.f32 %v215_v17, 0.0 }
  0xcb   : > { %v526_v18 = vsub.s32 %v523_v14, %v1013_v6 }
  0xcc   : > { %v213_v24 = vadd.f32 %v207_v23, %v201_v19  ;;  %v214_v25 = vadd.f32 %v207_v23, %v202_v20  ;;  %259 = vmatprep.subr.mxu0 %v220_v21  ;;  %660 = vmatprep.subr.mxu1 %v220_v21 }
  0xcd   : > { %260 = vmatpush1.msra.mxu0 %v219_v22  ;;  %662 = vmatpush1.msra.mxu1 %v219_v22 }
  0xce   : > { %v218_v26 = vmax.f32 %v214_v25, 0.0  ;;  %v217_v27 = vmax.f32 %v213_v24, 0.0  ;;  %v494_v54 = vpop.permute.xlu0 %493  ;;  %v498_v56 = vpop.permute.xlu1 %497 }
  0xd0   : > { %261 = vmatprep.subr.mxu0 %v218_v26  ;;  %661 = vmatprep.subr.mxu1 %v218_v26 }
  0xd1   : > { %262 = vmatpush1.msra.mxu0 %v217_v27  ;;  %663 = vmatpush1.msra.mxu1 %v217_v27 }
  0xd2   : > { %647 = vmatmul.mubr.msk.f32.vlgmr.msra.gmra.mxu0 %vm224_vm0, %v222_v28  ;;  %648 = vmatmul.mubr.msk.f32.vlgmr.msra.gmra.mxu1 %vm224_vm0, %v223_v29 }
  0xd3   : > { %385 = vmatprep.mubr.f32.mxu1 %v862_v4  ;;  %475 = vmatprep.mubr.f32.mxu0 %v862_v4 }
 0x192   : > { %v297_v30 = vpop.f32.mrf.mxu0  ;;  %v303_v31 = vpop.f32.mrf.mxu1 }
 0x193   : > { %v310_v35 = vmax.f32 %v303_v31, 0.0  ;;  %v308_v37 = vmax.f32 %v297_v30, 0.0 }
 0x194   : > { %v299_v32 = vpop.f32.mrf.mxu0  ;;  %v305_v33 = vpop.f32.mrf.mxu1 }
 0x195   : > { %v311_v34 = vmax.f32 %v305_v33, 0.0  ;;  %v309_v36 = vmax.f32 %v299_v32, 0.0 }
 0x197   : > { %349 = vmatprep.subr.mxu1 %v311_v34 }
 0x198   : > { %350 = vmatpush1.msra.mxu1 %v310_v35 }
 0x199   : > { %351 = vmatprep.subr.mxu1 %v309_v36 }
 0x19a   : > { %352 = vmatpush1.msra.mxu1 %v308_v37 }
 0x19b   : > { %649 = vmatmul.mubr.msk.f32.vlgmr.msra.gmra.mxu1 %vm224_vm0, %v313_v38 }
 0x19c   : > { %391 = vmatprep.mubr.f32.mxu1 %v862_v4 }
 0x19f   : > { %650 = vmatmul.mubr.msk.f32.gmra.mxu1 %vm224_vm0, %v314_v39 }
 0x25b   : > { %v387_v41 = vpop.f32.mrf.mxu1 }
 0x25c   : > { %v398_v48 = vmax.f32 %v387_v41, 0.0 }
 0x25d   : > { %v389_v42 = vpop.f32.mrf.mxu1 }
 0x25e   : > { %v399_v47 = vmax.f32 %v389_v42, 0.0 }
 0x25f   : > { %v393_v43 = vpop.f32.mrf.mxu1 }
 0x260   : > { %v400_v46 = vmax.f32 %v393_v43, 0.0 }
 0x261   : > { %v395_v44 = vpop.f32.mrf.mxu1 }
 0x262   : > { %v401_v45 = vmax.f32 %v395_v44, 0.0 }
 0x264   : > { %439 = vmatprep.subr.mxu0 %v401_v45 }
 0x265   : > { %440 = vmatpush1.msra.mxu0 %v400_v46 }
 0x266   : > { %441 = vmatprep.subr.mxu0 %v399_v47 }
 0x267   : > { %442 = vmatpush1.msra.mxu0 %v398_v48 }
 0x268   : > { %651 = vmatmul.mubr.msk.f32.vlgmr.msra.gmra.mxu0 %vm224_vm0, %v403_v49 }
 0x269   : > { %481 = vmatprep.mubr.f32.mxu0 %v862_v4 }
 0x26c   : > { %652 = vmatmul.mubr.msk.f32.gmra.mxu0 %vm224_vm0, %v404_v50 }
 0x328   : > { %v477_v51 = vpop.f32.mrf.mxu0 }
 0x329   : > { %v488_v53 = vmax.f32 %v477_v51, 0.0 }
 0x32a   : > { %v479_v52 = vpop.f32.mrf.mxu0 }
 0x32b   : > { %v489_v57 = vmax.f32 %v479_v52, 0.0  ;;  %v500_v60 = vmul.f32 %v494_v54, %v488_v53 }
 0x32c   : > { %v483_v55 = vpop.f32.mrf.mxu0 }
 0x32d   : > { %v490_v58 = vmax.f32 %v483_v55, 0.0  ;;  %v501_v63 = vmul.f32 %v494_v54, %v489_v57 }
 0x32e   : > { %v485_v59 = vpop.f32.mrf.mxu0 }
 0x32f   : > { %v502_v61 = vmul.f32 %v498_v56, %v490_v58  ;;  %v491_v62 = vmax.f32 %v485_v59, 0.0 }
 0x331   : > { %v504_v0 = vadd.f32 %v502_v61, %v500_v60  ;;  %v503_v1 = vmul.f32 %v498_v56, %v491_v62 }
 0x333   : > { %v505_v2 = vrot.slane %v504_v0, 4  ;;  %v511_v3 = vadd.f32 %v503_v1, %v501_v63 }
 0x335   : > { %v506_v4 = vadd.f32 %v505_v2, %v504_v0  ;;  %v512_v7 = vrot.slane %v511_v3, 4 }
 0x337   : > { %v507_v10 = vrot.slane %v506_v4, 2  ;;  %v513_v11 = vadd.f32 %v512_v7, %v511_v3 }
 0x339   : > { %v508_v12 = vadd.f32 %v507_v10, %v506_v4  ;;  %v514_v13 = vrot.slane %v513_v11, 2 }
 0x33b   : > { %v509_v15 = vrot.slane %v508_v12, 1  ;;  %v515_v16 = vadd.f32 %v514_v13, %v513_v11 }
 0x33d   : > { %v516_v17 = vrot.slane %v515_v16, 1  ;;  %v510_v19 = vadd.f32 %v509_v15, %v508_v12 }
 0x33f   : > { %v517_v20 = vadd.f32 %v516_v17, %v515_v16 }
 0x341   : > { %v520_v21 = vcombine.low %v510_v19, %v517_v20 }
 0x343   : > { %v527_v22 = vrot.slane %v520_v21, %v526_v18 }
 0x345   : > { %v534_v23 = vrot.slane %v527_v22, %v526_v18 }
 0x347   : > { %540 = vst.msk [vmem:[%s174_s17] sm:$0x3] %vm538_vm1, %v534_v23 }
 0x348   : > { %799 = shalt.err (!%p796_p0)
}
 0x349   : > { %s800_s27 = scalar_lea.hbm %s554_s20, 32  ;;  %s804_s4 = scalar_lea.hbm %s1070_s2, 64 }
 0x34a   : > { %p801_p5 = scmp.ne.s32.totalorder %s554_s20, %s800_s27  ;;  %p805_p1 = scmp.lt.s32.totalorder %s554_s20, %s1070_s2 }
 0x34b   : > { %p806_p4 = scmp.lt.s32.totalorder %s804_s4, %s800_s27 }
 0x34c   : > { %p802_p9 = pnand %p801_p5, %p1086_p3 }
 0x34d   : > { %p807_p6 = por %p806_p4, %p805_p1 }
 0x34e   : > { %p803_p12 = pneg %p802_p9 }
 0x350   : > { %p808_p8 = pnand %p807_p6, %p803_p12 }
 0x352   : > { %811 = shalt.err (!%p808_p8)
}
 0x353   : > { %670 = dma.vmem_to_hbm [thread:$0]  (%p1086_p3), %s557_s8, 32, %s554_s20, %s542_s23  }
 0x354 PF: > { %s568_s7 = sand.u32 1, %s842_s9   ;;  %p1087_p11 = scmp.ne.s32.totalorder %s1076_s16, 0 }
 0x355   : > { %p1088_p7 = scmp.ge.s32.totalorder %s854_s12, 2  ;;  %s569_s14 = scalar_lea.sflag [#allocation4], %s568_s7 }
 0x357   : > { %p681_p10 = pnand %p1088_p7, %p1087_p11 }
 0x359   : > { %p682_p2 = pneg %p681_p10 }
 0x35b   : > { %837 = dma.done.wait (%p682_p2), %s569_s14, 32  }
 0x35c   : > { %839 = vsyncadd (%p682_p2), %s569_s14, 4294967264  ;;  %p16_p13 = scmp.ge.s32.totalorder %s935_s21, 4   ;;  %s1089_s9 = smov %s846_s10 }
 0x35d   : > { %s1090_s10 = smov %s850_s11  ;;  %s1091_s11 = smov %s952_s29 }
 0x35e   : > { %s1092_s12 = smov %s935_s21  ;;  %18 = sbr.rel (!%p16_p13) target bundleno = 6 (0x6), region = 80 }
 0x363   :  { %574 = vsyncpa [#allocation3], 1 }
 0x364   :  { %576 = vsyncpa [#allocation3 + $0x1], 1 }
 0x365   :  { %577 = vsyncpa [#allocation6], 1 }
 0x366   :  { %578 = vsyncpa [#allocation4], 1 }
 0x367   :  { %580 = vsyncpa [#allocation4 + $0x1], 1 }

</bundles_post_ra>
